<compile_context>
chip_gen: v7x
topology: tpu7x:2x2x1
jax: 0.10.0
libtpu: 0.0.40
codegen_flags: <defaults>
</compile_context>

<pallas_src>
import math

import jax
import jax.numpy as jnp
from jax import lax
from jax.experimental import pallas as pl
from jax.experimental.pallas import tpu as pltpu


def _attention_kernel(num_heads, depth, use_bf16_exp):
    """Kernel body. Grid = (batch, q_tile, head); head = reduction axis."""

    def kernel(q_ref, k_ref, v_ref, wo_ref, bo_ref, o_ref, acc_ref):
        h = pl.program_id(2)

        @pl.when(h == 0)
        def _():
            acc_ref[...] = jnp.zeros_like(acc_ref)

        q = q_ref[0, 0]          # (tq, depth)     bf16, pre-scaled by 1/sqrt(depth)
        k = k_ref[0, 0]          # (S,  depth)     bf16
        v = v_ref[0, 0]          # (S,  depth+1)   bf16, last column = ones

        # scores = q @ k^T without an explicit transpose: contract the last
        # dim of both operands directly on the MXU.
        scores = lax.dot_general(
            q, k, dimension_numbers=(((1,), (1,)), ((), ())),
            preferred_element_type=jnp.float32)                     # (tq, S)

        # Numerically-stable softmax.  The row-sum (denominator) is produced
        # by the P@V matmul itself via the ones column of `v`, so there is no
        # cross-lane reduce here; normalization is deferred to the (tq, depth)
        # tile after the matmul.
        m = jnp.max(scores, axis=-1, keepdims=True)
        shifted = scores - m
        if use_bf16_exp:
            p = jnp.exp(shifted.astype(jnp.bfloat16))               # bf16 EUP (v6e/v7x)
        else:
            p = jnp.exp(shifted).astype(jnp.bfloat16)               # f32 EUP (v5e-safe)

        av = jnp.dot(p, v, preferred_element_type=jnp.float32)      # (tq, depth+1)
        denom = av[:, depth:]                                       # (tq, 1)
        attn = av[:, :depth] * pl.reciprocal(denom, approx=True)    # (tq, depth)

        # Fused head-concat + output projection:
        #   sum_h attn_h @ Wo[h] == concat(heads) @ Wo
        # Wo is VMEM-resident; the head slice is selected in-kernel.
        acc_ref[...] += jnp.dot(attn.astype(jnp.bfloat16), wo_ref[h],
                                preferred_element_type=jnp.float32)  # (tq, D)

        @pl.when(h == num_heads - 1)
        def _():
            o_ref[0] = (acc_ref[...] + bo_ref[...]).astype(o_ref.dtype)

    return kernel


def _pick_q_tile(S, B, score_bytes_budget=8 << 20):
    """Largest q-tile (multiple of 8, divisor of S) keeping the (tq, S)
    f32 score + bf16 p tiles under budget; capped to S//2 when B == 1 so the
    v7x megacore scheduler always sees >= 2 parallel blocks."""
    cap = int(min(256, max(8, score_bytes_budget // (6 * S))))
    if B == 1:
        cap = min(cap, max(8, S // 2))
    if S <= cap:
        return S
    t = (cap // 8) * 8
    while t >= 8:
        if S % t == 0:
            return t
        t -= 8
    return S  # fallback: no tiling (S has no suitable divisor)


def _vmem_limit_bytes():
    """Generation-aware scoped-VMEM ceiling (v7x has only 64 MiB physical)."""
    try:
        cap = pltpu.get_tpu_info().vmem_capacity_bytes
    except Exception:
        cap = 64 * 1024 * 1024
    return int(min(cap * 3 // 4, 96 * 1024 * 1024))


def _use_bf16_exp():
    """bf16 EUP exists on v6e / v7x; v5e and older must keep exp in f32."""
    try:
        kind = jax.devices()[0].device_kind.lower()
    except Exception:
        return False
    return ("v6" in kind) or ("v7" in kind)


def multi_head_attention(q, k, v, params, num_heads, *, q_tile=None):
    """Forward pass of the PyTorch MultiHeadAttention (eval mode, mask=None).

    q, k, v: (B, S, d_model) float32.
    params: dict wq/bq/wk/bk/wv/bv/wo/bo; (D, D) weights and (1, D) biases,
            applied as x @ W + b (the reference uses the same convention).
    """
    B, S, D = q.shape
    H = num_heads
    assert D % H == 0
    depth = D // H

    if q_tile is None:
        q_tile = _pick_q_tile(S, B)
    assert S % q_tile == 0, "S must be divisible by the query tile"
    n_qt = S // q_tile

    out_dtype = q.dtype
    scale = 1.0 / math.sqrt(depth)
    bf16, f32 = jnp.bfloat16, jnp.float32

    # ---- Input projections: ONCE per token, full d_model width (plain XLA
    # GEMMs on the MXU), then split per head and cast to bf16.  The
    # 1/sqrt(depth) scale is folded into the Q projection.
    def project(x, w, b, s=1.0):
        y = jnp.dot(x.astype(f32), w.astype(f32) * s,
                    preferred_element_type=f32) + b.astype(f32) * s
        return y.reshape(B, S, H, depth).transpose(0, 2, 1, 3)      # (B, H, S, dp)

    qh = project(q, params["wq"], params["bq"], scale).astype(bf16)
    kh = project(k, params["wk"], params["bk"]).astype(bf16)
    vh = project(v, params["wv"], params["bv"]).astype(bf16)
    # Ones column appended to V: the P@V matmul then also produces the softmax
    # denominator (no separate cross-lane row-sum in the kernel).
    vh = jnp.concatenate([vh, jnp.ones((B, H, S, 1), bf16)], axis=-1)

    # Output projection weight split per head; VMEM-resident for the whole
    # kernel (constant index_map => fetched once).
    wo_h = params["wo"].reshape(H, depth, D).astype(bf16)           # (H, dp, D)
    bo = params["bo"].astype(f32)                                   # (1, D)

    q_spec = pl.BlockSpec((1, 1, q_tile, depth), lambda b, qi, h: (b, h, qi, 0))
    k_spec = pl.BlockSpec((1, 1, S, depth), lambda b, qi, h: (b, h, 0, 0))
    v_spec = pl.BlockSpec((1, 1, S, depth + 1), lambda b, qi, h: (b, h, 0, 0))
    wo_spec = pl.BlockSpec((H, depth, D), lambda b, qi, h: (0, 0, 0))
    bo_spec = pl.BlockSpec((1, D), lambda b, qi, h: (0, 0))
    out_spec = pl.BlockSpec((1, q_tile, D), lambda b, qi, h: (b, qi, 0))

    # Kernel-only cost (projections now live in XLA outside the kernel).
    cost = pl.CostEstimate(
        flops=4 * B * S * S * D + 2 * B * S * D * D,      # QK^T + PV + Wo
        transcendentals=B * H * S * S,
        bytes_accessed=(B * S * D * 2                     # qh (bf16)
                        + 2 * B * n_qt * S * D * 2        # kh/vh per q-tile
                        + D * D * 2 + D * 4               # Wo, bo
                        + B * S * D * 4),                 # output (f32)
    )

    return pl.pallas_call(
        _attention_kernel(H, depth, _use_bf16_exp()),
        out_shape=jax.ShapeDtypeStruct((B, S, D), out_dtype),
        grid_spec=pltpu.PrefetchScalarGridSpec(
            num_scalar_prefetch=0,
            grid=(B, n_qt, H),
            in_specs=[q_spec, k_spec, v_spec, wo_spec, bo_spec],
            out_specs=out_spec,
            scratch_shapes=[pltpu.VMEM((q_tile, D), jnp.float32)],
        ),
        compiler_params=pltpu.CompilerParams(
            dimension_semantics=("parallel", "parallel", "arbitrary"),
            vmem_limit_bytes=_vmem_limit_bytes(),
        ),
        cost_estimate=cost,
    )(qh, kh, vh, wo_h, bo)


def _reference(q, k, v, params, num_heads):
    """Pure-JAX f32 reference of the PyTorch forward (dropout = identity)."""
    B, S, D = q.shape
    depth = D // num_heads

    def lin(x, w, b):
        return x @ w + b[0]

    qp = lin(q, params["wq"], params["bq"]).reshape(B, S, num_heads, depth).transpose(0, 2, 1, 3)
    kp = lin(k, params["wk"], params["bk"]).reshape(B, S, num_heads, depth).transpose(0, 2, 1, 3)
    vp = lin(v, params["wv"], params["bv"]).reshape(B, S, num_heads, depth).transpose(0, 2, 1, 3)

    scores = jnp.einsum("bhqd,bhkd->bhqk", qp, kp) / jnp.sqrt(jnp.float32(depth))
    probs = jax.nn.softmax(scores, axis=-1)
    out = jnp.einsum("bhqk,bhkd->bhqd", probs, vp)
    out = out.transpose(0, 2, 1, 3).reshape(B, S, D)
    return lin(out, params["wo"], params["bo"])


if __name__ == "__main__":
    B, S, D = 2, 8, 32
    num_heads = 4

    key = jax.random.PRNGKey(0)
    keys = jax.random.split(key, 11)

    q = jax.random.normal(keys[0], (B, S, D), dtype=jnp.float32)
    k = jax.random.normal(keys[1], (B, S, D), dtype=jnp.float32)
    v = jax.random.normal(keys[2], (B, S, D), dtype=jnp.float32)

    init = 1.0 / math.sqrt(D)
    params = {
        "wq": jax.random.uniform(keys[3], (D, D), jnp.float32, -init, init),
        "bq": jax.random.uniform(keys[4], (1, D), jnp.float32, -init, init),
        "wk": jax.random.uniform(keys[5], (D, D), jnp.float32, -init, init),
        "bk": jax.random.uniform(keys[6], (1, D), jnp.float32, -init, init),
        "wv": jax.random.uniform(keys[7], (D, D), jnp.float32, -init, init),
        "bv": jax.random.uniform(keys[8], (1, D), jnp.float32, -init, init),
        "wo": jax.random.uniform(keys[9], (D, D), jnp.float32, -init, init),
        "bo": jax.random.uniform(keys[10], (1, D), jnp.float32, -init, init),
    }

    out = multi_head_attention(q, k, v, params, num_heads)
    out = jax.block_until_ready(out)

    ref = _reference(q, k, v, params, num_heads)
    assert out.shape == (B, S, D)
    # bf16 MXU operands (+ bf16 exp on v6e/v7x) + approx reciprocal => looser
    # tolerance than pure f32.
    assert jnp.allclose(out, ref, atol=5e-2, rtol=5e-2), "mismatch vs reference"

    print("KERNEL_OK")
</pallas_src>

<mosaic_0001>
module attributes {stable_mosaic.version = 11 : i64} {
  func.func @kernel(%arg0: i32, %arg1: i32, %arg2: i32, %arg3: memref<1x1x8x8xbf16, #tpu.memory_space<vmem>>, %arg4: memref<1x1x8x8xbf16, #tpu.memory_space<vmem>>, %arg5: memref<1x1x8x9xbf16, #tpu.memory_space<vmem>>, %arg6: memref<4x8x32xbf16, #tpu.memory_space<vmem>>, %arg7: memref<1x32xf32, #tpu.memory_space<vmem>>, %arg8: memref<1x8x32xf32, #tpu.memory_space<vmem>>, %arg9: memref<8x32xf32, #tpu.memory_space<vmem>>) attributes {dimension_semantics = [#tpu.dimension_semantics<parallel>, #tpu.dimension_semantics<parallel>, #tpu.dimension_semantics<arbitrary>], iteration_bounds = array<i64: 2, 1, 4>, scalar_prefetch = 0 : i64, scratch_operands = 1 : i64, tpu.core_type = #tpu.core_type<tc>, window_params = [{transform_indices = @transform_0, window_bounds = array<i64: 1, 1, 8, 8>}, {transform_indices = @transform_1, window_bounds = array<i64: 1, 1, 8, 8>}, {transform_indices = @transform_2, window_bounds = array<i64: 1, 1, 8, 9>}, {pipeline_mode = #tpu.pipeline_mode<synchronous>, transform_indices = @transform_3, window_bounds = array<i64: 4, 8, 32>}, {pipeline_mode = #tpu.pipeline_mode<synchronous>, transform_indices = @transform_4, window_bounds = array<i64: 1, 32>}, {transform_indices = @transform_5, window_bounds = array<i64: 1, 8, 32>}]} {
    %c0_i32 = arith.constant 0 : i32
    %0 = arith.cmpi eq, %arg2, %c0_i32 : i32
    %1 = arith.extui %0 : i1 to i32
    %c0_i32_0 = arith.constant 0 : i32
    %2 = arith.cmpi ne, %1, %c0_i32_0 : i32
    scf.if %2 {
      %cst_22 = arith.constant 0.000000e+00 : f32
      %33 = vector.broadcast %cst_22 : f32 to vector<8x32xf32>
      %c0_23 = arith.constant 0 : index
      %c0_24 = arith.constant 0 : index
      %34 = vector.load %arg9[%c0_23, %c0_24] : memref<8x32xf32, #tpu.memory_space<vmem>>, vector<8x32xf32>
      tpu.vector_store %arg9[%c0_23, %c0_24], %33 {strides = array<i32>} : memref<8x32xf32, #tpu.memory_space<vmem>>, vector<8x32xf32>,
    } else {
    }
    %c0 = arith.constant 0 : index
    %c0_1 = arith.constant 0 : index
    %c0_2 = arith.constant 0 : index
    %c0_3 = arith.constant 0 : index
    %3 = vector.load %arg3[%c0, %c0_1, %c0_2, %c0_3] : memref<1x1x8x8xbf16, #tpu.memory_space<vmem>>, vector<1x1x8x8xbf16>
    %4 = vector.shape_cast %3 : vector<1x1x8x8xbf16> to vector<8x8xbf16>
    %c0_4 = arith.constant 0 : index
    %c0_5 = arith.constant 0 : index
    %c0_6 = arith.constant 0 : index
    %c0_7 = arith.constant 0 : index
    %5 = vector.load %arg4[%c0_4, %c0_5, %c0_6, %c0_7] : memref<1x1x8x8xbf16, #tpu.memory_space<vmem>>, vector<1x1x8x8xbf16>
    %6 = vector.shape_cast %5 : vector<1x1x8x8xbf16> to vector<8x8xbf16>
    %c0_8 = arith.constant 0 : index
    %c0_9 = arith.constant 0 : index
    %c0_10 = arith.constant 0 : index
    %c0_11 = arith.constant 0 : index
    %7 = vector.load %arg5[%c0_8, %c0_9, %c0_10, %c0_11] : memref<1x1x8x9xbf16, #tpu.memory_space<vmem>>, vector<1x1x8x9xbf16>
    %8 = vector.shape_cast %7 : vector<1x1x8x9xbf16> to vector<8x9xbf16>
    %cst = arith.constant dense<0.000000e+00> : vector<8x8xf32>
    %9 = tpu.matmul %4, %6, %cst {dimension_numbers = #tpu.dot_dimension_numbers<[1], [1], [0], [0], [0, 0, 1, 0], [], []>} : vector<8x8xbf16>, vector<8x8xbf16>, vector<8x8xf32> -> vector<8x8xf32>
    %cst_12 = arith.constant dense<0xFF800000> : vector<8xf32>
    %10 = vector.multi_reduction <maximumf>, %9, %cst_12 [1] : vector<8x8xf32> to vector<8xf32>
    %11 = vector.shape_cast %10 : vector<8xf32> to vector<8x1xf32>
    %12 = vector.broadcast %11 : vector<8x1xf32> to vector<8x8xf32>
    %13 = arith.subf %9, %12 : vector<8x8xf32>
    %14 = math.exp %13 : vector<8x8xf32>
    %15 = arith.truncf %14 : vector<8x8xf32> to vector<8x8xbf16>
    %cst_13 = arith.constant dense<0.000000e+00> : vector<8x9xf32>
    %16 = tpu.matmul %15, %8, %cst_13 {dimension_numbers = #tpu.dot_dimension_numbers<[1], [0], [0], [1], [0, 0, 1, 1], [], []>} : vector<8x8xbf16>, vector<8x9xbf16>, vector<8x9xf32> -> vector<8x9xf32>
    %17 = vector.extract_strided_slice %16 {offsets = [0, 8], sizes = [8, 1], strides = [1, 1]} : vector<8x9xf32> to vector<8x1xf32>
    %18 = vector.extract_strided_slice %16 {offsets = [0, 0], sizes = [8, 8], strides = [1, 1]} : vector<8x9xf32> to vector<8x8xf32>
    %19 = tpu.reciprocal %17 {approx = true} : vector<8x1xf32> -> vector<8x1xf32>
    %20 = vector.broadcast %19 : vector<8x1xf32> to vector<8x8xf32>
    %21 = arith.mulf %18, %20 : vector<8x8xf32>
    %c0_14 = arith.constant 0 : index
    %c0_15 = arith.constant 0 : index
    %22 = vector.load %arg9[%c0_14, %c0_15] : memref<8x32xf32, #tpu.memory_space<vmem>>, vector<8x32xf32>
    %23 = arith.truncf %21 : vector<8x8xf32> to vector<8x8xbf16>
    %24 = arith.index_cast %arg2 : i32 to index
    %c0_16 = arith.constant 0 : index
    %c0_17 = arith.constant 0 : index
    %25 = vector.load %arg6[%24, %c0_16, %c0_17] : memref<4x8x32xbf16, #tpu.memory_space<vmem>>, vector<1x8x32xbf16>
    %26 = vector.shape_cast %25 : vector<1x8x32xbf16> to vector<8x32xbf16>
    %cst_18 = arith.constant dense<0.000000e+00> : vector<8x32xf32>
    %27 = tpu.matmul %23, %26, %cst_18 {dimension_numbers = #tpu.dot_dimension_numbers<[1], [0], [0], [1], [0, 0, 1, 1], [], []>} : vector<8x8xbf16>, vector<8x32xbf16>, vector<8x32xf32> -> vector<8x32xf32>
    %28 = arith.addf %22, %27 : vector<8x32xf32>
    %c0_19 = arith.constant 0 : index
    %c0_20 = arith.constant 0 : index
    %29 = vector.load %arg9[%c0_19, %c0_20] : memref<8x32xf32, #tpu.memory_space<vmem>>, vector<8x32xf32>
    tpu.vector_store %arg9[%c0_19, %c0_20], %28 {strides = array<i32>} : memref<8x32xf32, #tpu.memory_space<vmem>>, vector<8x32xf32>,
    %c3_i32 = arith.constant 3 : i32
    %30 = arith.cmpi eq, %arg2, %c3_i32 : i32
    %31 = arith.extui %30 : i1 to i32
    %c0_i32_21 = arith.constant 0 : i32
    %32 = arith.cmpi ne, %31, %c0_i32_21 : i32
    scf.if %32 {
      %c0_22 = arith.constant 0 : index
      %c0_23 = arith.constant 0 : index
      %33 = vector.load %arg9[%c0_22, %c0_23] : memref<8x32xf32, #tpu.memory_space<vmem>>, vector<8x32xf32>
      %c0_24 = arith.constant 0 : index
      %c0_25 = arith.constant 0 : index
      %34 = vector.load %arg7[%c0_24, %c0_25] : memref<1x32xf32, #tpu.memory_space<vmem>>, vector<1x32xf32>
      %35 = vector.broadcast %34 : vector<1x32xf32> to vector<8x32xf32>
      %36 = arith.addf %33, %35 : vector<8x32xf32>
      %c0_26 = arith.constant 0 : index
      %c0_27 = arith.constant 0 : index
      %c0_28 = arith.constant 0 : index
      %37 = vector.load %arg8[%c0_26, %c0_27, %c0_28] : memref<1x8x32xf32, #tpu.memory_space<vmem>>, vector<1x8x32xf32>
      %38 = vector.shape_cast %37 : vector<1x8x32xf32> to vector<8x32xf32>
      %39 = vector.shape_cast %36 : vector<8x32xf32> to vector<1x8x32xf32>
      tpu.vector_store %arg8[%c0_26, %c0_27, %c0_28], %39 {strides = array<i32>} : memref<1x8x32xf32, #tpu.memory_space<vmem>>, vector<1x8x32xf32>,
    } else {
    }
    return
  }
  func.func @transform_0(%arg0: i32, %arg1: i32, %arg2: i32) -> (i32, i32, i32, i32) {
    %c0_i32 = arith.constant 0 : i32
    %c0_i32_0 = arith.constant 0 : i32
    return %arg0, %arg2, %arg1, %c0_i32 : i32, i32, i32, i32
  }
  func.func @transform_1(%arg0: i32, %arg1: i32, %arg2: i32) -> (i32, i32, i32, i32) {
    %c0_i32 = arith.constant 0 : i32
    %c0_i32_0 = arith.constant 0 : i32
    %c0_i32_1 = arith.constant 0 : i32
    return %arg0, %arg2, %c0_i32, %c0_i32_0 : i32, i32, i32, i32
  }
  func.func @transform_2(%arg0: i32, %arg1: i32, %arg2: i32) -> (i32, i32, i32, i32) {
    %c0_i32 = arith.constant 0 : i32
    %c0_i32_0 = arith.constant 0 : i32
    %c0_i32_1 = arith.constant 0 : i32
    return %arg0, %arg2, %c0_i32, %c0_i32_0 : i32, i32, i32, i32
  }
  func.func @transform_3(%arg0: i32, %arg1: i32, %arg2: i32) -> (i32, i32, i32) {
    %c0_i32 = arith.constant 0 : i32
    %c0_i32_0 = arith.constant 0 : i32
    %c0_i32_1 = arith.constant 0 : i32
    %c0_i32_2 = arith.constant 0 : i32
    return %c0_i32, %c0_i32_0, %c0_i32_1 : i32, i32, i32
  }
  func.func @transform_4(%arg0: i32, %arg1: i32, %arg2: i32) -> (i32, i32) {
    %c0_i32 = arith.constant 0 : i32
    %c0_i32_0 = arith.constant 0 : i32
    %c0_i32_1 = arith.constant 0 : i32
    return %c0_i32, %c0_i32_0 : i32, i32
  }
  func.func @transform_5(%arg0: i32, %arg1: i32, %arg2: i32) -> (i32, i32, i32) {
    %c0_i32 = arith.constant 0 : i32
    %c0_i32_0 = arith.constant 0 : i32
    return %arg0, %arg1, %c0_i32 : i32, i32, i32
  }
}

</mosaic_0001>

<bundles_post_ra>
// kernel: tpu_custom_call.1
= control target key start
LH: loop header
LB: loop body
LE: loop exit
PB: predicated region body
PF: predicated region fallthrough
CT: control target
= control target key end

     0   :  { %s1556_s0 = inlined_call_operand.hbm [shape: bf16[2,4,8,8], index: 0, kind: input, shape index: {}]   ;;  %s1557_s1 = inlined_call_operand.hbm [shape: bf16[2,4,8,8], index: 1, kind: input, shape index: {}]   ;;  %s1558_s2 = inlined_call_operand.hbm [shape: bf16[2,4,8,9], index: 2, kind: input, shape index: {}]   ;;  %s1559_s3 = inlined_call_operand.hbm [shape: bf16[4,8,32], index: 3, kind: input, shape index: {}]   ;;  %s1560_s4 = inlined_call_operand.vmem [shape: f32[1,32], index: 4, kind: input, shape index: {}]   ;;  %s1561_s5 = inlined_call_operand.hbm [shape: f32[2,8,32], index: 5, kind: output, shape index: {}]  }
   0x1   :  { %1583 = sst [smem:[#allocation28_spill]] %s1557_s1 }
   0x2   :  { %1584 = sst [smem:[#allocation29_spill]] %s1560_s4 }
   0x3   :  { %1585 = sst [smem:[#allocation30_spill]] %s1561_s5 }
   0x4   :  { %10 = vsyncpa [#allocation4], 0 }
   0x5   :  { %12 = vsyncpa [#allocation4 + $0x1], 0 }
   0x6   :  { %13 = vsyncpa [#allocation7], 0 }
   0x7   :  { %15 = vsyncpa [#allocation7 + $0x1], 0 }
   0x8   :  { %16 = vsyncpa [#allocation10], 0 }
   0x9   :  { %17 = vsyncpa [#allocation5], 0 }
   0xa   :  { %19 = vsyncpa [#allocation5 + $0x1], 0  ;;  %s1190_s18 = smov 0   ;;  %s1192_s19 = smov 0  }
   0xb   :  { %s1194_s20 = smov 0   ;;  %s1196_s21 = smov 0  }
   0xc   :  { %s1198_s22 = smov 0   ;;  %s1200_s23 = smov 0  }
   0xd   :  { %s1202_s24 = smov 0   ;;  %s1204_s25 = smov 0  }
   0xe   :  { %s1206_s26 = smov 0   ;;  %s1208_s27 = smov 0  }
   0xf   :  { %s1210_s28 = smov 0  }
  0x10 LB: > { %1586 = sst [smem:[#allocation16_spill]] %s1107_s18  ;;  %s37_s29 = sadd.s32 1, %s1139_s26  ;;  %s1147_s28 = sphi %s1210_s28, %s25_s28   ;;  %s1143_s27 = sphi %s1208_s27, %s1630_s27   ;;  %s1139_s26 = sphi %s1206_s26, %s1629_s26   ;;  %s1135_s25 = sphi %s1204_s25, %s1628_s25   ;;  %s1131_s24 = sphi %s1202_s24, %s1627_s24   ;;  %s1127_s23 = sphi %s1200_s23, %s1635_s23   ;;  %s1123_s22 = sphi %s1198_s22, %s1634_s22   ;;  %s1119_s21 = sphi %s1196_s21, %s1633_s21   ;;  %s1115_s20 = sphi %s1194_s20, %s1625_s20   ;;  %s1111_s19 = sphi %s1192_s19, %s1632_s19   ;;  %s1107_s18 = sphi %s1190_s18, %s1631_s18  }
  0x11   : > { %1587 = sst [smem:[#allocation17_spill]] %s1115_s20  ;;  %s44_s30 = sadd.s32 1, %s1143_s27 }
  0x12   : > { %1588 = sst [smem:[#allocation18_spill]] %s1135_s25  ;;  %p38_p0 = scmp.ge.s32.totalorder %s37_s29, 4 }
  0x13   : > { %1589 = sst [smem:[#allocation19_spill]] %s1139_s26  ;;  %s55_s6 = sadd.s32 1, %s1127_s23 }
  0x14   : > { %1590 = sst [smem:[#allocation20_spill]] %s1143_s27  ;;  %p62_p1 = scmp.ne.s32.totalorder %s1127_s23, %s1123_s22 }
  0x15   : > { %1591 = sst [smem:[#allocation21_spill]] %s1147_s28  ;;  %p63_p2 = scmp.eq.s32.totalorder %s1147_s28, 0 }
  0x16   : > { %s1637_s29 = smov (%p38_p0, %s37_s29), 0  ;;  %s1639_s30 = smov (!%p38_p0, %s44_s30), %s1143_s27 }
  0x17   : > { %1592 = sst [smem:[#allocation22_spill]] %s1637_s29  ;;  %s49_s7 = ssub.s32 %s1139_s26, %s1637_s29 }
  0x18   : > { %p1256_p3 = por %p63_p2, %p62_p1  ;;  %p46_p4 = scmp.ge.s32.totalorder %s1639_s30, 2 }
  0x19   : > { %s181_s9 = sadd.s32 1, %s1115_s20  ;;  %p796_p5 = scmp.lt.s32.totalorder %s1147_s28, 8 }
  0x1a   : > { %s1641_s30 = smov (%p46_p4, %s1639_s30), 0  ;;  %s1564_s10 = sand.u32 1, %s1127_s23  }
  0x1b   : > { %1594 = sst [smem:[#allocation23_spill]] %s1641_s30  ;;  %s716_s11 = sshll.u32 %s1143_s27, 2 }
  0x1c   : > { %s48_s12 = ssub.s32 %s1143_s27, %s1641_s30  ;;  %s1270_s13 = sshll.u32 %s1564_s10, 2 }
  0x1d   : > { %s50_s14 = sor.u32 %s49_s7, %s48_s12  ;;  %p179_p6 = scmp.eq.s32.totalorder %s48_s12, 0 }
  0x1e   : > { %p53_p7 = scmp.eq.s32.totalorder %s50_s14, 0  ;;  %s244_s15 = sadd.s32 %s1139_s26, %s716_s11 }
  0x1f   : > { %s1274_s16 = scalar_select %p179_p6, %s1115_s20, %s181_s9  }
  0x20   : > { %s1277_s17 = scalar_select %p53_p7, %s1127_s23, %s55_s6  }
  0x21   : > { %1595 = sst [smem:[#allocation24_spill]] %s1274_s16  ;;  %s1279_s29 = sshll.u32 %s244_s15, 6 }
  0x22   : > { %1596 = sst [smem:[#allocation25_spill]] %s1277_s17  ;;  %p1285_p8 = pnand %p796_p5, %p1256_p3 }
  0x23   : > { %s255_s10 = sand.u32 1, %s1147_s28   ;;  %s1598_s1 = sld [smem:[#allocation28_spill]] }
  0x24   : > { %s1597_s5 = scalar_select %p1285_p8, 1, 0 }
  0x25   : > { %s259_s6 = scalar_lea.vmem [#allocation6], %s1270_s13  ;;  %s1299_s8 = scalar_lea.sflag [#allocation7], %s255_s10 }
  0x26   : > { %s268_s9 = sshll.u32 %s259_s6, 4  ;;  %p1305_p10 = pneg %p1285_p8  ;;  %s1297_s9 = int_to_ptr.vmem [resolvable:$true] %s268_s9 }
  0x28   : > { %s1599_s14 = scalar_select %p1305_p10, 1, 0 }
  0x29   : > { %s1294_s12 = scalar_lea.hbm %s1598_s1, %s1279_s29  ;;  %s904_s7 = scalar_lea.hbm %s1598_s1, 512 }
  0x2a   : > { %s899_s11 = scalar_lea.hbm %s1294_s12, 64  ;;  %p905_p13 = scmp.lt.u32.totalorder %s1294_s12, %s1598_s1 }
  0x2b   : > { %p900_p9 = scmp.ne.s32.totalorder %s1294_s12, %s899_s11  ;;  %p906_p0 = scmp.lt.u32.totalorder %s904_s7, %s899_s11 }
  0x2c   : > { %p908_p2 = scmp.lt.u32.totalorder %s899_s11, %s1294_s12 }
  0x2d   : > { %p902_p11 = pnand %p1305_p10, %p900_p9  ;;  %p907_p1 = por %p906_p0, %p905_p13 }
  0x2f   : > { %p903_p12 = pneg %p902_p11  ;;  %p909_p3 = por %p908_p2, %p907_p1 }
  0x31   : > { %p910_p4 = pnand %p909_p3, %p903_p12 }
  0x33   : > { %913 = shalt.err (!%p910_p4)
}
  0x34   : > { %s914_s10 = scalar_lea.vmem %s1297_s9, 64  ;;  %s1149_s30 = smov [#allocation6]  }
  0x35   : > { %p915_p5 = scmp.ne.s32.totalorder %s1297_s9, %s914_s10  ;;  %s919_s15 = sshll.u32 %s1149_s30, 4  ;;  %s920_s15 = int_to_ptr.vmem [resolvable:$false] %s919_s15 }
  0x36   : > { %s921_s27 = scalar_lea.vmem %s920_s15, 128  ;;  %p922_p9 = scmp.lt.s32.totalorder %s1297_s9, %s920_s15 }
  0x37   : > { %p917_p6 = pnand %p915_p5, %p1305_p10  ;;  %p923_p11 = scmp.lt.s32.totalorder %s921_s27, %s914_s10 }
  0x39   : > { %p918_p7 = pneg %p917_p6  ;;  %p924_p13 = por %p923_p11, %p922_p9 }
  0x3b   : > { %p925_p0 = pnand %p924_p13, %p918_p7 }
  0x3d   : > { %928 = shalt.err (!%p925_p0)
}
  0x3e   : > { %787 = dma.hbm_to_vmem [thread:$0]  (!%p1285_p8), %s1294_s12, 64, %s1297_s9, %s1299_s8  }
  0x3f   : > { %s1330_s11 = sadd.s32 4294967295, %s1147_s28   ;;  %s711_s7 = sadd.s32 4294967294, %s1147_s28  }
  0x40   : > { %p68_p12 = scmp.ne.s32.totalorder %s1123_s22, %s1119_s21  ;;  %p1571_p1 = scmp.eq.s32.totalorder %s1330_s11, 0 }
  0x41   : > { %p191_p2 = scmp.ne.s32.totalorder %s1115_s20, %s1111_s19  ;;  %p192_p3 = scmp.eq.s32.totalorder %s1330_s11, 7 }
  0x42   : > { %p197_p4 = scmp.ne.s32.totalorder %s1111_s19, %s1107_s18  ;;  %p1343_p5 = por %p1571_p1, %p68_p12 }
  0x43   : > { %p198_p6 = scmp.eq.s32.totalorder %s711_s7, 7  ;;  %p1347_p7 = por %p192_p3, %p191_p2 }
  0x44   : > { %s1600_s6 = scalar_select %p1343_p5, 1, 0 }
  0x45   : > { %s1601_s12 = scalar_select %p1347_p7, 1, 0 }
  0x46   : > { %p712_p9 = scmp.ge.s32.totalorder %s1147_s28, 1  ;;  %p1352_p11 = por %p198_p6, %p197_p4 }
  0x47   : > { %1602 = sst [smem:[#allocation26_spill]] %s1601_s12  ;;  %p205_p13 = scmp.lt.s32.totalorder %s1147_s28, 9 }
  0x48   : > { %s1603_s21 = scalar_select %p1352_p11, 1, 0 }
  0x49   : > { %p1357_p0 = pnand %p712_p9, %p205_p13  ;;  %s1150_s10 = smov [#allocation9]  }
  0x4a   : > { %1604 = sst [smem:[#allocation27_spill]] %s1603_s21  ;;  %s217_s30 = sshll.u32 %s1150_s10, 4  ;;  %s1361_s30 = int_to_ptr.vmem [resolvable:$true] %s217_s30 }
  0x4b   : > { %s1605_s9 = scalar_select %p1357_p0, 1, 0 }
  0x4c   : > { %p777_p12 = pneg %p1357_p0  ;;  %s1375_s1 = scalar_lea.hbm %s1556_s0, %s1279_s29 }
  0x4d   : > { %s238_s26 = scalar_lea.vmem [#allocation3], %s1270_s13  ;;  %s929_s20 = scalar_lea.hbm %s1559_s3, 256 }
  0x4e   : > { %p1367_p2 = pnand %p777_p12, %p1571_p1  ;;  %s248_s17 = sshll.u32 %s238_s26, 4  ;;  %s1378_s17 = int_to_ptr.vmem [resolvable:$true] %s248_s17 }
  0x4f   : > { %p930_p3 = scmp.ne.s32.totalorder %s1559_s3, %s929_s20  ;;  %p936_p13 = scmp.lt.u32.totalorder %s929_s20, %s1559_s3 }
  0x50   : > { %p931_p4 = pneg %p1367_p2 }
  0x52   : > { %p932_p6 = pnand %p931_p4, %p930_p3 }
  0x54   : > { %p933_p9 = pneg %p932_p6 }
  0x56   : > { %p938_p12 = pnand %p936_p13, %p933_p9 }
  0x58   : > { %941 = shalt.err (!%p938_p12)
}
  0x59   : > { %s942_s26 = scalar_lea.vmem %s1361_s30, 256  ;;  %p950_p5 = scmp.lt.s32.totalorder %s1361_s30, %s1361_s30 }
  0x5a   : > { %p943_p1 = scmp.ne.s32.totalorder %s1361_s30, %s942_s26  ;;  %p951_p0 = scmp.lt.s32.totalorder %s942_s26, %s942_s26 }
  0x5c   : > { %p945_p11 = pnand %p943_p1, %p931_p4  ;;  %p952_p8 = por %p951_p0, %p950_p5 }
  0x5e   : > { %p946_p7 = pneg %p945_p11 }
  0x60   : > { %p953_p10 = pnand %p952_p8, %p946_p7 }
  0x62   : > { %956 = shalt.err (!%p953_p10)
}
  0x63   : > { %s1151_s18 = smov 64   ;;  %s1152_s20 = smov 4  }
  0x64   : > { %780 = dma.hbm_to_vmem [thread:$0]  (!%p1367_p2), %s1559_s3, 256, %s1361_s30, [#allocation10], %s1151_s18, %s1151_s18, %s1152_s20  }
  0x65   : > { %s1607_s10 = sand.u32 1, %s1127_s23   ;;  %s957_s7 = scalar_lea.hbm %s1375_s1, 64 }
  0x66   : > { %s235_s27 = scalar_lea.sflag [#allocation4], %s1607_s10  ;;  %p958_p8 = scmp.ne.s32.totalorder %s1375_s1, %s957_s7 }
  0x67   : > { %p1608_p10 = scmp.ne.s32.totalorder %s1599_s14, 0  ;;  %s962_s12 = scalar_lea.hbm %s1556_s0, 512 }
  0x68   : > { %p963_p7 = scmp.lt.u32.totalorder %s1375_s1, %s1556_s0  ;;  %p964_p11 = scmp.lt.u32.totalorder %s962_s12, %s957_s7 }
  0x69   : > { %p960_p1 = pnand %p958_p8, %p1608_p10  ;;  %p966_p3 = scmp.lt.u32.totalorder %s957_s7, %s1375_s1 }
  0x6a   : > { %p965_p0 = por %p964_p11, %p963_p7 }
  0x6b   : > { %p961_p5 = pneg %p960_p1 }
  0x6c   : > { %p967_p4 = por %p966_p3, %p965_p0 }
  0x6e   : > { %p968_p2 = pnand %p967_p4, %p961_p5 }
  0x70   : > { %971 = shalt.err (!%p968_p2)
}
  0x71   : > { %s972_s30 = scalar_lea.vmem %s1378_s17, 64  ;;  %s1153_s28 = smov [#allocation3]  }
  0x72   : > { %p973_p6 = scmp.ne.s32.totalorder %s1378_s17, %s972_s30  ;;  %s977_s15 = sshll.u32 %s1153_s28, 4  ;;  %s978_s15 = int_to_ptr.vmem [resolvable:$false] %s977_s15 }
  0x73   : > { %s979_s4 = scalar_lea.vmem %s978_s15, 128  ;;  %p980_p12 = scmp.lt.s32.totalorder %s1378_s17, %s978_s15 }
  0x74   : > { %p975_p9 = pnand %p973_p6, %p1608_p10  ;;  %p981_p8 = scmp.lt.s32.totalorder %s979_s4, %s972_s30 }
  0x76   : > { %p976_p13 = pneg %p975_p9  ;;  %p982_p1 = por %p981_p8, %p980_p12 }
  0x78   : > { %p983_p7 = pnand %p982_p1, %p976_p13 }
  0x7a   : > { %986 = shalt.err (!%p983_p7)
}
  0x7b   : > { %p1609_p5 = scmp.ne.s32.totalorder %s1597_s5, 0  ;;  %s1428_s18 = scalar_lea.hbm %s1558_s2, %s1279_s29 }
  0x7c   : > { %s279_s20 = scalar_lea.vmem [#allocation8], %s1270_s13  ;;  %s987_s21 = scalar_lea.hbm %s1428_s18, 64 }
  0x7d   : > { %784 = dma.hbm_to_vmem [thread:$0]  (!%p1609_p5), %s1375_s1, 64, %s1378_s17, %s235_s27  }
  0x7e   : > { %s288_s16 = sshll.u32 %s279_s20, 4  ;;  %p988_p11 = scmp.ne.s32.totalorder %s1428_s18, %s987_s21  ;;  %s289_s16 = int_to_ptr.vmem [resolvable:$true] %s288_s16 }
  0x7f   : > { %s992_s1 = scalar_lea.hbm %s1558_s2, 512  ;;  %p993_p4 = scmp.lt.u32.totalorder %s1428_s18, %s1558_s2 }
  0x80   : > { %p990_p0 = pnand %p988_p11, %p1608_p10  ;;  %p994_p2 = scmp.lt.u32.totalorder %s992_s1, %s987_s21 }
  0x81   : > { %p996_p9 = scmp.lt.u32.totalorder %s987_s21, %s1428_s18 }
  0x82   : > { %p991_p3 = pneg %p990_p0  ;;  %p995_p6 = por %p994_p2, %p993_p4 }
  0x84   : > { %p997_p13 = por %p996_p9, %p995_p6 }
  0x86   : > { %p998_p12 = pnand %p997_p13, %p991_p3 }
  0x88   : > { %1001 = shalt.err (!%p998_p12)
}
  0x89   : > { %s1002_s29 = scalar_lea.vmem %s289_s16, 64  ;;  %s1154_s13 = smov [#allocation8]  }
  0x8a   : > { %p1003_p8 = scmp.ne.s32.totalorder %s289_s16, %s1002_s29  ;;  %s1007_s26 = sshll.u32 %s1154_s13, 4  ;;  %s1008_s26 = int_to_ptr.vmem [resolvable:$false] %s1007_s26 }
  0x8b   : > { %s1009_s30 = scalar_lea.vmem %s1008_s26, 128  ;;  %p1010_p11 = scmp.lt.s32.totalorder %s289_s16, %s1008_s26 }
  0x8c   : > { %p1005_p1 = pnand %p1003_p8, %p1608_p10  ;;  %p1011_p0 = scmp.lt.s32.totalorder %s1009_s30, %s1002_s29 }
  0x8e   : > { %p1006_p7 = pneg %p1005_p1  ;;  %p1012_p5 = por %p1011_p0, %p1010_p11 }
  0x90   : > { %p1013_p2 = pnand %p1012_p5, %p1006_p7 }
  0x92   : > { %1016 = shalt.err (!%p1013_p2)
}
  0x93   : > { %p1610_p4 = scmp.ne.s32.totalorder %s1597_s5, 0  ;;  %p1611_p3 = scmp.ne.s32.totalorder %s1605_s9, 0 }
  0x94   : > { %s299_s14 = sand.u32 (!%p1611_p3), 1, %s1123_s22   ;;  %p1612_p10 = scmp.ne.s32.totalorder (!%p1611_p3), %s1600_s6, 0 }
  0x95   : > { %790 = dma.hbm_to_vmem [thread:$0]  (!%p1610_p4), %s1428_s18, 64, %s289_s16, %s1299_s8  }
  0x96   : > { %297 = sbr.rel (%p1611_p3) target bundleno = 1161 (0x489), region = 40  ;;  %s1452_s28 = sshll.u32 (!%p1611_p3), %s299_s14, 2 }
  0x97   : > { %s300_s15 = scalar_lea.sflag (!%p1611_p3), [#allocation4], %s299_s14  ;;  %s303_s4 = scalar_lea.vmem (!%p1611_p3), [#allocation3], %s1452_s28 }
  0x9d   : > { %1090 = dma.done.wait (%p1612_p10), %s300_s15, 64  }
  0x9e   : > { %1092 = vsyncadd (%p1612_p10), %s300_s15, 4294967232  ;;  %s308_s5 = sand.u32 1, %s1330_s11   ;;  %s312_s9 = scalar_lea.vmem [#allocation6], %s1452_s28 }
  0x9f   : > { %s309_s8 = scalar_lea.sflag [#allocation7], %s308_s5 }
  0xa0   : > { %1094 = dma.done.wait (%p1612_p10), %s309_s8, 128  }
  0xa1   : > { %1096 = vsyncadd (%p1612_p10), %s309_s8, 4294967168  ;;  %s321_s25 = scalar_lea.vmem [#allocation8], %s1452_s28  ;;  %p1613_p5 = scmp.eq.s32.totalorder %s1330_s11, 0 }
  0xa3   : > { %1098 = dma.done.wait (%p1613_p5), [#allocation10], 256   ;;  %p1614_p6 = pmov %p1613_p5 }
  0xa4   : > { %s359_s12 = sand.u32 1, %s1111_s19   ;;  %p730_p9 = scmp.ne.s32.totalorder %s1131_s24, 0 }
  0xa5   : > { %1100 = vsyncadd (%p1614_p6), [#allocation10], 4294967040  ;;  %s1473_s18 = sshll.u32 %s359_s12, 3  ;;  %vm367_vm0 = vcmask (!%p730_p9), 261120   ;;  %v1155_v0 = vmov (!%p730_p9), 0.0  }
  0xa6   : > { %s361_s20 = scalar_lea.vmem [#allocation11], %s1473_s18  ;;  %366 = sbr.rel (%p730_p9) target bundleno = 173 (0xad), region = 60  ;;  %368 = vst.msk [vmem:[#allocation2] sm:$0xff] (!%p730_p9), %vm367_vm0, %v1155_v0 }
  0xad PF: > { %v370_v1 = vld [vmem:[%s312_s9] sm:$0xf]  ;;  %vm372_vm1 = vcmask 64512   ;;  %v1156_v2 = vmov 0.0   ;;  %vm1157_vm2 = vmmov 0   ;;  %vm429_vm3 = vcmask 1043456  }
  0xae   : > { %747 = vmatprep.subr.bf16.mxu0 %v1156_v2  ;;  %v377_v3 = vsel %vm372_vm1, %v370_v1, 0  ;;  %749 = vmatprep.mubr.msk.bf16.mxu0 %vm1157_vm2, %v1156_v2  ;;  %v369_v4 = vld [vmem:[%s303_s4] sm:$0xf]  ;;  %v371_v10 = vld [vmem:[%s321_s25] sm:$0xf]  ;;  %s733_s11 = sshll.u32 %s1131_s24, 2 }
  0xaf   : > { %748 = vmatpush3.bf16.xpose.msra.mxu0 %v377_v3  ;;  %753 = vmatprep.subr.bf16.mxu1 %v1156_v2  ;;  %v431_v11 = vsel %vm429_vm3, %v371_v10, 0  ;;  %s483_s6 = scalar_lea.vmem [#allocation9], %s733_s11  ;;  %v1158_v19 = vmov 8   ;;  %v480_v28 = vld [vmem:[#allocation2] sm:$0xff]  ;;  %vm532_vm4 = vcmask 261120   ;;  %p735_p13 = scmp.ne.s32.totalorder %s1131_s24, 3 }
  0xb0   : > { %755 = vmatprep.mubr.msk.bf16.mxu1 %vm1157_vm2, %v1156_v2  ;;  %754 = vmatpush3.bf16.msra.mxu1 %v431_v11  ;;  %v484_v15 = vld [vmem:[%s483_s6] sm:$0xf]  ;;  %s1615_s10 = sld [smem:[#allocation29_spill]] (!%p735_p13) }
  0xb1   : > { %759 = vmatprep.subr.bf16.mxu1 %v1156_v2  ;;  %v489_v18 = vsel %vm429_vm3, %v484_v15, 0  ;;  %894 = vset.pattern.permute.xlu0 %v1158_v19 }
  0xb6   : > { %750 = vmatmul.mubr.msk.bf16.vlgmr.msra.gmra.mrb[0].mxu0 %vm372_vm1, %v369_v4  ;;  %v736_v35 = vld [vmem:[%s1615_s10] ss:$0 sm:$0xff] (!%p735_p13) }
 0x189   : > { %v413_v5 = vpop.f32.mrb[0].mxu0 }
 0x18a   : > { %v751_v6 = vpop.f32.mrb[1].mxu0  ;;  %v419_v7 = vsel %vm372_vm1, %v413_v5, -inf }
 0x18b   : > { %420 = vmax.xlane.f32.xlu0 %v419_v7  ;;  %v416_v8 = vpop.f32.mrb[2].mxu0 }
 0x18c   : > { %v752_v9 = vpop.f32.mrb[3].mxu0 }
 0x218   : > { %v421_v12 = vpop.xlane.xlu0 %420 }
 0x219   : > { %v422_v13 = vsub.f32 %v413_v5, %v421_v12 }
 0x21b   : > { %v423_v14 = vmul.f32 1.442695, %v422_v13 }
 0x21d   : > { %895 = vpow2.f32 %v423_v14 }
 0x227   : > { %v896_v16 = vpop.eup %895 }
 0x228   : > { %v425_v17 = vpack.c.bf16 %v896_v16, %v896_v16 }
 0x22a   : > { %756 = vmatmul.mubr.msk.bf16.vlgmr.msra.gmra.mrb[0].mxu1 %vm372_vm1, %v425_v17 }
 0x22b   : > { %760 = vmatpush3.bf16.msra.mxu1 %v489_v18  ;;  %761 = vmatprep.mubr.msk.bf16.mxu1 %vm1157_vm2, %v1156_v2 }
 0x2fd   : > { %v467_v20 = vpop.f32.mrb[0].mxu1 }
 0x2fe   : > { %897 = vrcp.f32 %v467_v20  ;;  %v757_v21 = vpop.f32.mrb[1].mxu1 }
 0x2ff   : > { %v470_v22 = vpop.f32.mrb[2].mxu1 }
 0x300   : > { %v758_v23 = vpop.f32.mrb[3].mxu1 }
 0x308   : > { %v898_v24 = vpop.eup %897 }
 0x309   : > { %476 = vperm.xlu0 %894, %v898_v24  }
 0x388   : > { %v477_v25 = vpop.permute.xlu0 %476 }
 0x389   : > { %v479_v26 = vmul.f32 %v477_v25, %v467_v20 }
 0x38b   : > { %v481_v27 = vpack.c.bf16 %v479_v26, %v479_v26 }
 0x38d   : > { %762 = vmatmul.mubr.msk.bf16.vlgmr.msra.gmra.mrb[4].mxu1 %vm372_vm1, %v481_v27 }
 0x45d   : > { %537 = sbr.rel (%p735_p13) target bundleno = 1134 (0x46e), region = 64 }
 0x460   : > { %v525_v29 = vpop.f32.mrb[4].mxu1 }
 0x461   : > { %v531_v30 = vadd.f32 %v525_v29, %v480_v28  ;;  %v763_v31 = vpop.f32.mrb[5].mxu1 }
 0x462   : > { %v528_v32 = vpop.f32.mrb[6].mxu1 }
 0x463   : > { %533 = vst.msk [vmem:[#allocation2] sm:$0xff] %vm532_vm4, %v531_v30  ;;  %v764_v33 = vpop.f32.mrb[7].mxu1 }
 0x46a   : > { %v538_v34 = vld [vmem:[#allocation2] sm:$0xff] }
 0x46b   : > { %v546_v36 = vadd.f32 %v736_v35, %v538_v34 }
 0x46d   : > { %547 = vst.msk [vmem:[%s361_s20] sm:$0xff] %vm532_vm4, %v546_v36 }
 0x46e PF: > { %s1616_s7 = sld [smem:[#allocation18_spill]]  ;;  %s1617_s1 = sld [smem:[#allocation26_spill]] }
 0x46f   : > { %s1618_s13 = sld [smem:[#allocation30_spill]]  ;;  %s563_s26 = sshll.u32 %s361_s20, 4  ;;  %s564_s26 = int_to_ptr.vmem [resolvable:$true] %s563_s26 }
 0x470   : > { %s549_s30 = scalar_lea.sflag [#allocation5], %s359_s12  ;;  %s1017_s14 = scalar_lea.vmem %s564_s26, 128 }
 0x471   : > { %p1018_p12 = scmp.ne.s32.totalorder %s564_s26, %s1017_s14  ;;  %s1159_s28 = smov [#allocation11]  }
 0x472   : > { %s1021_s15 = sshll.u32 %s1159_s28, 4  ;;  %s1022_s15 = int_to_ptr.vmem [resolvable:$false] %s1021_s15 }
 0x473   : > { %s1023_s4 = scalar_lea.vmem %s1022_s15, 256  ;;  %p1024_p11 = scmp.lt.s32.totalorder %s564_s26, %s1022_s15 }
 0x474   : > { %s738_s17 = sshll.u32 %s1616_s7, 7  ;;  %p1619_p8 = scmp.ne.s32.totalorder %s1617_s1, 0 }
 0x475   : > { %s1496_s24 = scalar_lea.hbm %s1618_s13, %s738_s17  ;;  %p1025_p0 = scmp.lt.s32.totalorder %s1023_s4, %s1017_s14 }
 0x476   : > { %p1019_p1 = pnand %p1018_p12, %p1619_p8 }
 0x477   : > { %p1026_p2 = por %p1025_p0, %p1024_p11 }
 0x478   : > { %p1020_p7 = pneg %p1019_p1 }
 0x47a   : > { %p1027_p4 = pnand %p1026_p2, %p1020_p7 }
 0x47c   : > { %1030 = shalt.err (!%p1027_p4)
}
 0x47d   : > { %s1031_s5 = scalar_lea.hbm %s1496_s24, 128  ;;  %s1035_s25 = scalar_lea.hbm %s1618_s13, 256 }
 0x47e   : > { %p1032_p3 = scmp.ne.s32.totalorder %s1496_s24, %s1031_s5  ;;  %p1036_p6 = scmp.lt.u32.totalorder %s1496_s24, %s1618_s13 }
 0x47f   : > { %p1037_p9 = scmp.lt.u32.totalorder %s1035_s25, %s1031_s5  ;;  %p1039_p12 = scmp.lt.u32.totalorder %s1031_s5, %s1496_s24 }
 0x480   : > { %p1033_p10 = pnand %p1032_p3, %p1619_p8 }
 0x481   : > { %p1038_p13 = por %p1037_p9, %p1036_p6 }
 0x482   : > { %p1034_p5 = pneg %p1033_p10 }
 0x483   : > { %p1040_p1 = por %p1039_p12, %p1038_p13 }
 0x485   : > { %p1041_p7 = pnand %p1040_p1, %p1034_p5 }
 0x487   : > { %1044 = shalt.err (!%p1041_p7)
}
 0x488   : > { %775 = dma.vmem_to_hbm [thread:$0]  (%p1619_p8), %s564_s26, 128, %s1496_s24, %s549_s30  }
 0x489 PF: > { %s1620_s20 = sld [smem:[#allocation21_spill]]  ;;  %s1621_s11 = sld [smem:[#allocation16_spill]] }
 0x48a   : > { %s1622_s6 = sld [smem:[#allocation27_spill]] }
 0x48f   : > { %p798_p11 = scmp.ge.s32.totalorder %s1620_s20, 2  ;;  %s575_s16 = sand.u32 1, %s1621_s11  }
 0x490   : > { %p1623_p0 = scmp.ne.s32.totalorder %s1622_s6, 0  ;;  %s576_s21 = scalar_lea.sflag [#allocation5], %s575_s16 }
 0x492   : > { %p792_p2 = pnand %p798_p11, %p1623_p0 }
 0x494   : > { %1102 = dma.done.wait (!%p792_p2), %s576_s21, 128  }
 0x495   : > { %1104 = vsyncadd (!%p792_p2), %s576_s21, 4294967168  ;;  %s25_s28 = sadd.s32 1, %s1620_s20   ;;  %s1624_s10 = sld [smem:[#allocation17_spill]] }
 0x496   : > { %p22_p4 = scmp.ge.s32.totalorder %s25_s28, 10   ;;  %s1625_s20 = sld [smem:[#allocation24_spill]] }
 0x497   : > { %s1626_s7 = sld [smem:[#allocation25_spill]]  ;;  %s1627_s24 = sld [smem:[#allocation19_spill]] }
 0x498   : > { %s1628_s25 = sld [smem:[#allocation20_spill]]  ;;  %s1629_s26 = sld [smem:[#allocation22_spill]] }
 0x499   : > { %s1630_s27 = sld [smem:[#allocation23_spill]]  ;;  %s1631_s18 = smov %s1111_s19 }
 0x49a   : > { %s1633_s21 = smov %s1123_s22  ;;  %s1634_s22 = smov %s1127_s23 }
 0x49b   : > { %s1632_s19 = smov %s1624_s10  ;;  %24 = sbr.rel (!%p22_p4) target bundleno = 16 (0x10), region = 122 }
 0x49d   : > { %s1635_s23 = smov %s1626_s7 }
 0x4a2   :  { %581 = vsyncpa [#allocation4], 1 }
 0x4a3   :  { %583 = vsyncpa [#allocation4 + $0x1], 1 }
 0x4a4   :  { %584 = vsyncpa [#allocation7], 1 }
 0x4a5   :  { %586 = vsyncpa [#allocation7 + $0x1], 1 }
 0x4a6   :  { %587 = vsyncpa [#allocation10], 1 }
 0x4a7   :  { %588 = vsyncpa [#allocation5], 1 }
 0x4a8   :  { %590 = vsyncpa [#allocation5 + $0x1], 1 }

</bundles_post_ra>
